<compile_context>
chip_gen: v7x
topology: tpu7x:2x2x1
jax: 0.10.0
libtpu: 0.0.40
codegen_flags: <defaults>
</compile_context>

<pallas_src>
import jax
import jax.numpy as jnp
from jax import lax
from jax.experimental import pallas as pl
from jax.experimental.pallas import tpu as pltpu

BN_EPS = 1e-5
KH = KW = 4
STRIDE = 2


def _round_up(x, m):
    return ((x + m - 1) // m) * m


# --------------------------- Pass 1: conv + stats ----------------------------
def _conv_stats_kernel(pt_ref, w_ref, y_ref, sum_ref, sq_ref):
    """pt_ref: (K, TM) bf16, w_ref: (Cout, K) bf16, y_ref: (Cout, TM) f32,
    sum_ref / sq_ref: (Cout, 1) f32 resident accumulators."""
    i = pl.program_id(0)

    @pl.when(i == 0)
    def _():
        sum_ref[...] = jnp.zeros_like(sum_ref)
        sq_ref[...] = jnp.zeros_like(sq_ref)

    y = jnp.dot(w_ref[...], pt_ref[...], preferred_element_type=jnp.float32)
    y_ref[...] = y
    sum_ref[...] += jnp.sum(y, axis=1, keepdims=True)
    sq_ref[...] += jnp.sum(y * y, axis=1, keepdims=True)


# ----------------------- Pass 2: BN affine + PReLU ---------------------------
def _bn_prelu_kernel(y_ref, scale_ref, shift_ref, alpha_ref, out_ref):
    """y_ref/out_ref: (Cout, TM) f32; scale/shift/alpha: (Cout, 1) f32."""
    z = y_ref[...] * scale_ref[...] + shift_ref[...]
    out_ref[...] = jnp.where(z >= 0.0, z, alpha_ref[...] * z)


# ------------------------------- im2col --------------------------------------
def _im2col_kM(x):
    """x: (N, Cin, H, W) -> patches_T (Cin*KH*KW, N*Hout*Wout).

    Row index k = ci*KH*KW + kh*KW + kw matches the PyTorch OIHW weight
    flatten; column index m = n*Hout*Wout + ho*Wout + wo.
    """
    n, cin, h, w = x.shape
    hout = (h - KH) // STRIDE + 1
    wout = (w - KW) // STRIDE + 1
    slices = []
    for kh in range(KH):
        for kw in range(KW):
            sl = x[:, :,
                   kh:kh + STRIDE * (hout - 1) + 1:STRIDE,
                   kw:kw + STRIDE * (wout - 1) + 1:STRIDE]  # (N, Cin, Hout, Wout)
            slices.append(sl)
    p = jnp.stack(slices, axis=0)                 # (KH*KW, N, Cin, Hout, Wout)
    p = jnp.transpose(p, (2, 0, 1, 3, 4))         # (Cin, KH*KW, N, Hout, Wout)
    patches_t = p.reshape(cin * KH * KW, n * hout * wout)
    return patches_t, hout, wout


# ------------------------------- wrapper --------------------------------------
@jax.jit
def d_layer_forward(a, b, conv_w, conv_b, bn_gamma, bn_beta, prelu_alpha):
    """a, b: (N, Ca, H, W), (N, Cb, H, W) f32 NCHW; conv_w: (Cout, Cin, 4, 4);
    conv_b/bn_gamma/bn_beta: (Cout,); prelu_alpha: scalar.
    Returns (N, Cout, Hout, Wout) f32 NCHW."""
    del conv_b  # exactly cancelled by training-mode BatchNorm mean subtraction
    x = jnp.concatenate([a, b], axis=1)
    n = x.shape[0]
    cout, cin = conv_w.shape[0], conv_w.shape[1]

    patches_t, hout, wout = _im2col_kM(x)          # (K, M)
    k, m = patches_t.shape

    # Tile the M axis. Zero-padded columns produce y == 0 (no conv bias), so
    # they contribute nothing to the batch statistics.
    tm = min(1024, _round_up(m, 128))
    m_pad = _round_up(m, tm)
    if m_pad != m:
        patches_t = jnp.pad(patches_t, ((0, 0), (0, m_pad - m)))

    patches_bf16 = patches_t.astype(jnp.bfloat16)
    w_mat = conv_w.reshape(cout, cin * KH * KW).astype(jnp.bfloat16)  # (Cout, K)

    grid = (m_pad // tm,)

    y_t, ch_sum, ch_sq = pl.pallas_call(
        _conv_stats_kernel,
        out_shape=(jax.ShapeDtypeStruct((cout, m_pad), jnp.float32),
                   jax.ShapeDtypeStruct((cout, 1), jnp.float32),
                   jax.ShapeDtypeStruct((cout, 1), jnp.float32)),
        grid=grid,
        in_specs=[pl.BlockSpec((k, tm), lambda i: (0, i)),
                  pl.BlockSpec((cout, k), lambda i: (0, 0))],
        out_specs=(pl.BlockSpec((cout, tm), lambda i: (0, i)),
                   pl.BlockSpec((cout, 1), lambda i: (0, 0)),
                   pl.BlockSpec((cout, 1), lambda i: (0, 0))),
        compiler_params=pltpu.CompilerParams(
            dimension_semantics=("arbitrary",)),
    )(patches_bf16, w_mat)

    # BatchNorm2d training-mode statistics over the true M rows (f32 accum;
    # values are O(1) so E[y^2]-E[y]^2 has no cancellation issue here).
    inv_m = 1.0 / float(m)
    mean = ch_sum * inv_m                                   # (Cout, 1)
    var = jnp.maximum(ch_sq * inv_m - mean * mean, 0.0)
    scale = bn_gamma.reshape(cout, 1) * lax.rsqrt(var + BN_EPS)
    shift = bn_beta.reshape(cout, 1) - mean * scale
    alpha = jnp.full((cout, 1), prelu_alpha, dtype=jnp.float32)

    out_t = pl.pallas_call(
        _bn_prelu_kernel,
        out_shape=jax.ShapeDtypeStruct((cout, m_pad), jnp.float32),
        grid=grid,
        in_specs=[pl.BlockSpec((cout, tm), lambda i: (0, i)),
                  pl.BlockSpec((cout, 1), lambda i: (0, 0)),
                  pl.BlockSpec((cout, 1), lambda i: (0, 0)),
                  pl.BlockSpec((cout, 1), lambda i: (0, 0))],
        out_specs=pl.BlockSpec((cout, tm), lambda i: (0, i)),
        compiler_params=pltpu.CompilerParams(
            dimension_semantics=("parallel",)),
    )(y_t, scale, shift, alpha)

    out = out_t[:, :m].reshape(cout, n, hout, wout)
    return jnp.transpose(out, (1, 0, 2, 3))                 # back to NCHW


# ------------------------------ reference -------------------------------------
def _reference_forward(a, b, conv_w, conv_b, bn_gamma, bn_beta, prelu_alpha,
                       conv_dtype=jnp.float32):
    """Pure-JAX reference mirroring PyTorch semantics. `conv_dtype` lets us
    build a precision-matched (bf16-operand) reference for the kernel."""
    x = jnp.concatenate([a, b], axis=1)
    y = lax.conv_general_dilated(
        x.astype(conv_dtype), conv_w.astype(conv_dtype),
        window_strides=(STRIDE, STRIDE), padding="VALID",
        dimension_numbers=("NCHW", "OIHW", "NCHW"),
        preferred_element_type=jnp.float32)
    y = y + conv_b.reshape(1, -1, 1, 1)
    mean = jnp.mean(y, axis=(0, 2, 3), keepdims=True)
    var = jnp.mean((y - mean) ** 2, axis=(0, 2, 3), keepdims=True)
    y = (y - mean) * lax.rsqrt(var + BN_EPS)
    y = bn_gamma.reshape(1, -1, 1, 1) * y + bn_beta.reshape(1, -1, 1, 1)
    return jnp.where(y >= 0.0, y, prelu_alpha * y)


if __name__ == "__main__":
    key = jax.random.PRNGKey(0)
    k_a, k_b, k_w, k_bias = jax.random.split(key, 4)

    # a and b each carry 2 channels -> in_channels=4, out_channels=8.
    N, Ca, Cb, H, W = 2, 2, 2, 16, 16
    Cin, Cout = Ca + Cb, 8

    a = jax.random.normal(k_a, (N, Ca, H, W), dtype=jnp.float32)
    b = jax.random.normal(k_b, (N, Cb, H, W), dtype=jnp.float32)

    conv_w = 0.1 * jax.random.normal(k_w, (Cout, Cin, KH, KW), dtype=jnp.float32)
    conv_b = 0.05 * jax.random.normal(k_bias, (Cout,), dtype=jnp.float32)
    bn_gamma = jnp.ones((Cout,), dtype=jnp.float32)     # PyTorch BN default init
    bn_beta = jnp.zeros((Cout,), dtype=jnp.float32)
    prelu_alpha = jnp.float32(0.25)                     # nn.PReLU() default

    out = d_layer_forward(a, b, conv_w, conv_b, bn_gamma, bn_beta, prelu_alpha)
    out = jax.block_until_ready(out)

    hout = (H - KH) // STRIDE + 1
    wout = (W - KW) // STRIDE + 1
    assert out.shape == (N, Cout, hout, wout)

    # Precision-matched reference (bf16 MXU operands, f32 accumulation).
    ref_bf16 = _reference_forward(a, b, conv_w, conv_b, bn_gamma, bn_beta,
                                  prelu_alpha, conv_dtype=jnp.bfloat16)
    assert jnp.allclose(out, ref_bf16, atol=2e-3, rtol=2e-3), \
        "mismatch vs bf16-matched reference"

    # Full-f32 reference with tolerance covering bf16 operand quantization.
    ref_f32 = _reference_forward(a, b, conv_w, conv_b, bn_gamma, bn_beta,
                                 prelu_alpha, conv_dtype=jnp.float32)
    assert jnp.allclose(out, ref_f32, atol=5e-2, rtol=5e-2), \
        "mismatch vs f32 reference"

    print("KERNEL_OK")
</pallas_src>

<mosaic_0001>
module attributes {stable_mosaic.version = 11 : i64} {
  func.func @_conv_stats_kernel(%arg0: i32, %arg1: memref<64x128xbf16, #tpu.memory_space<vmem>>, %arg2: memref<8x64xbf16, #tpu.memory_space<vmem>>, %arg3: memref<8x128xf32, #tpu.memory_space<vmem>>, %arg4: memref<8x1xf32, #tpu.memory_space<vmem>>, %arg5: memref<8x1xf32, #tpu.memory_space<vmem>>) attributes {dimension_semantics = [#tpu.dimension_semantics<arbitrary>], iteration_bounds = array<i64: 1>, scalar_prefetch = 0 : i64, scratch_operands = 0 : i64, tpu.core_type = #tpu.core_type<tc>, window_params = [{transform_indices = @transform_0, window_bounds = array<i64: 64, 128>}, {pipeline_mode = #tpu.pipeline_mode<synchronous>, transform_indices = @transform_1, window_bounds = array<i64: 8, 64>}, {transform_indices = @transform_2, window_bounds = array<i64: 8, 128>}, {pipeline_mode = #tpu.pipeline_mode<synchronous>, transform_indices = @transform_3, window_bounds = array<i64: 8, 1>}, {pipeline_mode = #tpu.pipeline_mode<synchronous>, transform_indices = @transform_4, window_bounds = array<i64: 8, 1>}]} {
    %c0_i32 = arith.constant 0 : i32
    %0 = arith.cmpi eq, %arg0, %c0_i32 : i32
    %1 = arith.extui %0 : i1 to i32
    %c0_i32_0 = arith.constant 0 : i32
    %2 = arith.cmpi ne, %1, %c0_i32_0 : i32
    scf.if %2 {
      %cst_16 = arith.constant 0.000000e+00 : f32
      %18 = vector.broadcast %cst_16 : f32 to vector<8x1xf32>
      %c0_17 = arith.constant 0 : index
      %c0_18 = arith.constant 0 : index
      %19 = vector.load %arg4[%c0_17, %c0_18] : memref<8x1xf32, #tpu.memory_space<vmem>>, vector<8x1xf32>
      tpu.vector_store %arg4[%c0_17, %c0_18], %18 {strides = array<i32>} : memref<8x1xf32, #tpu.memory_space<vmem>>, vector<8x1xf32>,
      %cst_19 = arith.constant 0.000000e+00 : f32
      %20 = vector.broadcast %cst_19 : f32 to vector<8x1xf32>
      %c0_20 = arith.constant 0 : index
      %c0_21 = arith.constant 0 : index
      %21 = vector.load %arg5[%c0_20, %c0_21] : memref<8x1xf32, #tpu.memory_space<vmem>>, vector<8x1xf32>
      tpu.vector_store %arg5[%c0_20, %c0_21], %20 {strides = array<i32>} : memref<8x1xf32, #tpu.memory_space<vmem>>, vector<8x1xf32>,
    } else {
    }
    %c0 = arith.constant 0 : index
    %c0_1 = arith.constant 0 : index
    %3 = vector.load %arg2[%c0, %c0_1] : memref<8x64xbf16, #tpu.memory_space<vmem>>, vector<8x64xbf16>
    %c0_2 = arith.constant 0 : index
    %c0_3 = arith.constant 0 : index
    %4 = vector.load %arg1[%c0_2, %c0_3] : memref<64x128xbf16, #tpu.memory_space<vmem>>, vector<64x128xbf16>
    %cst = arith.constant dense<0.000000e+00> : vector<8x128xf32>
    %5 = tpu.matmul %3, %4, %cst {dimension_numbers = #tpu.dot_dimension_numbers<[1], [0], [0], [1], [0, 0, 1, 1], [], []>} : vector<8x64xbf16>, vector<64x128xbf16>, vector<8x128xf32> -> vector<8x128xf32>
    %c0_4 = arith.constant 0 : index
    %c0_5 = arith.constant 0 : index
    %6 = vector.load %arg3[%c0_4, %c0_5] : memref<8x128xf32, #tpu.memory_space<vmem>>, vector<8x128xf32>
    tpu.vector_store %arg3[%c0_4, %c0_5], %5 {strides = array<i32>} : memref<8x128xf32, #tpu.memory_space<vmem>>, vector<8x128xf32>,
    %c0_6 = arith.constant 0 : index
    %c0_7 = arith.constant 0 : index
    %7 = vector.load %arg4[%c0_6, %c0_7] : memref<8x1xf32, #tpu.memory_space<vmem>>, vector<8x1xf32>
    %cst_8 = arith.constant dense<0.000000e+00> : vector<8xf32>
    %8 = vector.multi_reduction <add>, %5, %cst_8 [1] : vector<8x128xf32> to vector<8xf32>
    %9 = vector.shape_cast %8 : vector<8xf32> to vector<8x1xf32>
    %10 = arith.addf %7, %9 : vector<8x1xf32>
    %c0_9 = arith.constant 0 : index
    %c0_10 = arith.constant 0 : index
    %11 = vector.load %arg4[%c0_9, %c0_10] : memref<8x1xf32, #tpu.memory_space<vmem>>, vector<8x1xf32>
    tpu.vector_store %arg4[%c0_9, %c0_10], %10 {strides = array<i32>} : memref<8x1xf32, #tpu.memory_space<vmem>>, vector<8x1xf32>,
    %c0_11 = arith.constant 0 : index
    %c0_12 = arith.constant 0 : index
    %12 = vector.load %arg5[%c0_11, %c0_12] : memref<8x1xf32, #tpu.memory_space<vmem>>, vector<8x1xf32>
    %13 = arith.mulf %5, %5 : vector<8x128xf32>
    %cst_13 = arith.constant dense<0.000000e+00> : vector<8xf32>
    %14 = vector.multi_reduction <add>, %13, %cst_13 [1] : vector<8x128xf32> to vector<8xf32>
    %15 = vector.shape_cast %14 : vector<8xf32> to vector<8x1xf32>
    %16 = arith.addf %12, %15 : vector<8x1xf32>
    %c0_14 = arith.constant 0 : index
    %c0_15 = arith.constant 0 : index
    %17 = vector.load %arg5[%c0_14, %c0_15] : memref<8x1xf32, #tpu.memory_space<vmem>>, vector<8x1xf32>
    tpu.vector_store %arg5[%c0_14, %c0_15], %16 {strides = array<i32>} : memref<8x1xf32, #tpu.memory_space<vmem>>, vector<8x1xf32>,
    return
  }
  func.func @transform_0(%arg0: i32) -> (i32, i32) {
    %c0_i32 = arith.constant 0 : i32
    %c0_i32_0 = arith.constant 0 : i32
    return %c0_i32, %arg0 : i32, i32
  }
  func.func @transform_1(%arg0: i32) -> (i32, i32) {
    %c0_i32 = arith.constant 0 : i32
    %c0_i32_0 = arith.constant 0 : i32
    %c0_i32_1 = arith.constant 0 : i32
    return %c0_i32, %c0_i32_0 : i32, i32
  }
  func.func @transform_2(%arg0: i32) -> (i32, i32) {
    %c0_i32 = arith.constant 0 : i32
    %c0_i32_0 = arith.constant 0 : i32
    return %c0_i32, %arg0 : i32, i32
  }
  func.func @transform_3(%arg0: i32) -> (i32, i32) {
    %c0_i32 = arith.constant 0 : i32
    %c0_i32_0 = arith.constant 0 : i32
    %c0_i32_1 = arith.constant 0 : i32
    return %c0_i32, %c0_i32_0 : i32, i32
  }
  func.func @transform_4(%arg0: i32) -> (i32, i32) {
    %c0_i32 = arith.constant 0 : i32
    %c0_i32_0 = arith.constant 0 : i32
    %c0_i32_1 = arith.constant 0 : i32
    return %c0_i32, %c0_i32_0 : i32, i32
  }
}

module attributes {stable_mosaic.version = 11 : i64} {
  func.func @_bn_prelu_kernel(%arg0: i32, %arg1: memref<8x128xf32, #tpu.memory_space<vmem>>, %arg2: memref<8x1xf32, #tpu.memory_space<vmem>>, %arg3: memref<8x1xf32, #tpu.memory_space<vmem>>, %arg4: memref<8x1xf32, #tpu.memory_space<vmem>>, %arg5: memref<8x128xf32, #tpu.memory_space<vmem>>) attributes {dimension_semantics = [#tpu.dimension_semantics<parallel>], iteration_bounds = array<i64: 1>, scalar_prefetch = 0 : i64, scratch_operands = 0 : i64, tpu.core_type = #tpu.core_type<tc>, window_params = [{transform_indices = @transform_0, window_bounds = array<i64: 8, 128>}, {pipeline_mode = #tpu.pipeline_mode<synchronous>, transform_indices = @transform_1, window_bounds = array<i64: 8, 1>}, {pipeline_mode = #tpu.pipeline_mode<synchronous>, transform_indices = @transform_2, window_bounds = array<i64: 8, 1>}, {pipeline_mode = #tpu.pipeline_mode<synchronous>, transform_indices = @transform_3, window_bounds = array<i64: 8, 1>}, {transform_indices = @transform_4, window_bounds = array<i64: 8, 128>}]} {
    %c0 = arith.constant 0 : index
    %c0_0 = arith.constant 0 : index
    %0 = vector.load %arg1[%c0, %c0_0] : memref<8x128xf32, #tpu.memory_space<vmem>>, vector<8x128xf32>
    %c0_1 = arith.constant 0 : index
    %c0_2 = arith.constant 0 : index
    %1 = vector.load %arg2[%c0_1, %c0_2] : memref<8x1xf32, #tpu.memory_space<vmem>>, vector<8x1xf32>
    %2 = vector.broadcast %1 : vector<8x1xf32> to vector<8x128xf32>
    %3 = arith.mulf %0, %2 : vector<8x128xf32>
    %c0_3 = arith.constant 0 : index
    %c0_4 = arith.constant 0 : index
    %4 = vector.load %arg3[%c0_3, %c0_4] : memref<8x1xf32, #tpu.memory_space<vmem>>, vector<8x1xf32>
    %5 = vector.broadcast %4 : vector<8x1xf32> to vector<8x128xf32>
    %6 = arith.addf %3, %5 : vector<8x128xf32>
    %cst = arith.constant 0.000000e+00 : f32
    %7 = vector.broadcast %cst : f32 to vector<8x128xf32>
    %8 = arith.cmpf oge, %6, %7 : vector<8x128xf32>
    %c0_5 = arith.constant 0 : index
    %c0_6 = arith.constant 0 : index
    %9 = vector.load %arg4[%c0_5, %c0_6] : memref<8x1xf32, #tpu.memory_space<vmem>>, vector<8x1xf32>
    %10 = vector.broadcast %9 : vector<8x1xf32> to vector<8x128xf32>
    %11 = arith.mulf %10, %6 : vector<8x128xf32>
    %12 = arith.select %8, %6, %11 : vector<8x128xi1>, vector<8x128xf32>
    %c0_7 = arith.constant 0 : index
    %c0_8 = arith.constant 0 : index
    %13 = vector.load %arg5[%c0_7, %c0_8] : memref<8x128xf32, #tpu.memory_space<vmem>>, vector<8x128xf32>
    tpu.vector_store %arg5[%c0_7, %c0_8], %12 {strides = array<i32>} : memref<8x128xf32, #tpu.memory_space<vmem>>, vector<8x128xf32>,
    return
  }
  func.func @transform_0(%arg0: i32) -> (i32, i32) {
    %c0_i32 = arith.constant 0 : i32
    %c0_i32_0 = arith.constant 0 : i32
    return %c0_i32, %arg0 : i32, i32
  }
  func.func @transform_1(%arg0: i32) -> (i32, i32) {
    %c0_i32 = arith.constant 0 : i32
    %c0_i32_0 = arith.constant 0 : i32
    %c0_i32_1 = arith.constant 0 : i32
    return %c0_i32, %c0_i32_0 : i32, i32
  }
  func.func @transform_2(%arg0: i32) -> (i32, i32) {
    %c0_i32 = arith.constant 0 : i32
    %c0_i32_0 = arith.constant 0 : i32
    %c0_i32_1 = arith.constant 0 : i32
    return %c0_i32, %c0_i32_0 : i32, i32
  }
  func.func @transform_3(%arg0: i32) -> (i32, i32) {
    %c0_i32 = arith.constant 0 : i32
    %c0_i32_0 = arith.constant 0 : i32
    %c0_i32_1 = arith.constant 0 : i32
    return %c0_i32, %c0_i32_0 : i32, i32
  }
  func.func @transform_4(%arg0: i32) -> (i32, i32) {
    %c0_i32 = arith.constant 0 : i32
    %c0_i32_0 = arith.constant 0 : i32
    return %c0_i32, %arg0 : i32, i32
  }
}

</mosaic_0001>

<bundles_post_ra>
// kernel: d_layer_forward.2
= control target key start
LH: loop header
LB: loop body
LE: loop exit
PB: predicated region body
PF: predicated region fallthrough
CT: control target
= control target key end

     0   :  { %v152_v0 = vmov 0.0   ;;  %vm153_vm0 = vmmov 0   ;;  %vm55_vm1 = vcmask 523264   ;;  %vm19_vm2 = vcmask 7168   ;;  %s219_s0 = inlined_call_operand.vmem [shape: bf16[64,128], index: 0, kind: input, shape index: {}]   ;;  %s220_s1 = inlined_call_operand.vmem [shape: bf16[8,64], index: 1, kind: input, shape index: {}]   ;;  %s221_s3 = inlined_call_operand.vmem [shape: f32[8,1], index: 3, kind: output, shape index: {1}]   ;;  %s222_s2 = inlined_call_operand.vmem [shape: f32[8,128], index: 2, kind: output, shape index: {0}]   ;;  %s223_s4 = inlined_call_operand.vmem [shape: f32[8,1], index: 4, kind: output, shape index: {2}]  }
   0x1   :  { %134 = vmatprep.subr.bf16.mxu0 %v152_v0  ;;  %v148_v1 = vld [vmem:[%s219_s0] sm:$0xff]   ;;  %142 = vmatprep.mubr.msk.bf16.mxu0 %vm153_vm0, %v152_v0  ;;  %v149_v2 = vld [vmem:[%s219_s0 + $0x8] sm:$0xff]   ;;  %v150_v3 = vld [vmem:[%s219_s0 + $0x10] sm:$0xff]   ;;  %20 = vst.msk [vmem:[%s221_s3] sm:$0xff] %vm19_vm2, %v152_v0 }
   0x2   :  { %135 = vmatpush3.bf16.msra.mxu0 %v148_v1  ;;  %v151_v4 = vld [vmem:[%s219_s0 + $0x18] sm:$0xff]   ;;  %v22_v5 = vld [vmem:[%s220_s1] sm:$0xf]  ;;  %21 = vst.msk [vmem:[%s223_s4] sm:$0xff] %vm19_vm2, %v152_v0 }
   0x3   :  { %136 = vmatprep.subr.bf16.mxu0 %v152_v0 }
   0x6   :  { %137 = vmatpush3.bf16.msra.mxu0 %v149_v2 }
   0x7   :  { %138 = vmatprep.subr.bf16.mxu0 %v152_v0 }
   0x8   :  { %v100_v11 = vld [vmem:[%s221_s3] sm:$0xff] }
   0x9   :  { %v106_v14 = vld [vmem:[%s223_s4] sm:$0xff] }
   0xa   :  { %139 = vmatpush3.bf16.msra.mxu0 %v150_v3 }
   0xb   :  { %140 = vmatprep.subr.bf16.mxu0 %v152_v0 }
   0xe   :  { %141 = vmatpush3.bf16.msra.mxu0 %v151_v4 }
  0x11   :  { %143 = vmatmul.mubr.msk.bf16.vlgmr.msra.gmra.mrb[0].mxu0 %vm55_vm1, %v22_v5 }
  0xe4   :  { %v93_v6 = vpop.f32.mrb[0].mxu0 }
  0xe5   :  { %99 = vst [vmem:[%s222_s2] sm:$0xff] %v93_v6  ;;  %101 = vadd.xlane.f32.xlu0 %v93_v6  ;;  %v144_v7 = vpop.f32.mrb[1].mxu0  ;;  %v107_v10 = vmul.f32 %v93_v6, %v93_v6 }
  0xe6   :  { %v96_v8 = vpop.f32.mrb[2].mxu0 }
  0xe7   :  { %v145_v9 = vpop.f32.mrb[3].mxu0 }
  0xe9   :  { %108 = vadd.xlane.f32.xlu0 %v107_v10 }
 0x172   :  { %v102_v12 = vpop.xlane.xlu0 %101 }
 0x173   :  { %v103_v13 = vadd.f32 %v102_v12, %v100_v11 }
 0x175   :  { %105 = vst.msk [vmem:[%s221_s3] sm:$0xff] %vm19_vm2, %v103_v13 }
 0x176   :  { %v109_v15 = vpop.xlane.xlu0 %108 }
 0x177   :  { %v110_v16 = vadd.f32 %v109_v15, %v106_v14 }
 0x179   :  { %111 = vst.msk [vmem:[%s223_s4] sm:$0xff] %vm19_vm2, %v110_v16 }

// kernel: d_layer_forward.3
= control target key start
LH: loop header
LB: loop body
LE: loop exit
PB: predicated region body
PF: predicated region fallthrough
CT: control target
= control target key end

     0   :  { %v49_v0 = vmov 0   ;;  %s90_s1 = inlined_call_operand.vmem [shape: f32[8,1], index: 1, kind: input, shape index: {}]   ;;  %s91_s2 = inlined_call_operand.vmem [shape: f32[8,1], index: 2, kind: input, shape index: {}]   ;;  %s92_s3 = inlined_call_operand.vmem [shape: f32[8,1], index: 3, kind: input, shape index: {}]   ;;  %s93_s0 = inlined_call_operand.vmem [shape: f32[8,128], index: 0, kind: input, shape index: {}]   ;;  %s94_s4 = inlined_call_operand.vmem [shape: f32[8,128], index: 4, kind: output, shape index: {}]  }
   0x1   :  { %47 = vset.pattern.permute.xlu0 %v49_v0  ;;  %v18_v1 = vld [vmem:[%s90_s1] sm:$0xff]  ;;  %48 = vset.pattern.permute.xlu1 %v49_v0 }
   0x2   :  { %v33_v2 = vld [vmem:[%s92_s3] sm:$0xff]  ;;  %21 = vperm.xlu0 %47, %v18_v1  }
   0x3   :  { %36 = vperm.xlu1 %48, %v33_v2   ;;  %v25_v3 = vld [vmem:[%s91_s2] sm:$0xff] }
   0x4   :  { %v17_v5 = vld [vmem:[%s93_s0] sm:$0xff] }
   0x6   :  { %28 = vperm.xlu0 %47, %v25_v3  }
  0x81   :  { %v22_v4 = vpop.permute.xlu0 %21 }
  0x82   :  { %v24_v6 = vmul.f32 %v22_v4, %v17_v5  ;;  %v37_v8 = vpop.permute.xlu1 %36 }
  0x85   :  { %v29_v7 = vpop.permute.xlu0 %28 }
  0x86   :  { %v31_v9 = vadd.f32 %v29_v7, %v24_v6 }
  0x88   :  { %vm32_vm0 = vcmp.ge.f32.partialorder %v31_v9, 0.0  ;;  %v39_v10 = vmul.f32 %v37_v8, %v31_v9 }
  0x8a   :  { %v40_v11 = vsel %vm32_vm0, %v31_v9, %v39_v10 }
  0x8b   :  { %41 = vst [vmem:[%s94_s4] sm:$0xff] %v40_v11 }

</bundles_post_ra>
